<compile_context>
chip_gen: v6e
topology: v6e:2x2x1
jax: 0.10.0
libtpu: 0.0.40
codegen_flags: <defaults>
</compile_context>

<pallas_src>
import functools

import jax
import jax.numpy as jnp
from jax import lax
from jax.experimental import pallas as pl
from jax.experimental.pallas import tpu as pltpu


TR_MAX = 1024    # sublane-rows per grid step (input block = 5 x TR x 128 f32)
P_SPLIT = 2      # extra "parallel" row-split axis (v7x megacore balance)


def _rcp(x):
    """Approximate reciprocal (EUP vrcp) refined with one Newton step."""
    r = pl.reciprocal(x, approx=True)
    return r * (2.0 - x * r)


def _yolo_loss_kernel(n_cells, anch_ref, pred_ref, targ_ref, out_ref,
                      acc_obj, acc_noobj, cnt_obj, cnt_noobj):
    a = pl.program_id(0)      # anchor index        (parallel)
    sp = pl.program_id(1)     # row-split index     (parallel)
    j = pl.program_id(2)      # row-tile index      (arbitrary / reduction)
    nj = pl.num_programs(2)

    @pl.when(j == 0)
    def _():
        acc_obj[...] = jnp.zeros_like(acc_obj)
        acc_noobj[...] = jnp.zeros_like(acc_noobj)
        cnt_obj[...] = jnp.zeros_like(cnt_obj)
        cnt_noobj[...] = jnp.zeros_like(cnt_noobj)

    # per-anchor scalars from SMEM: [aw, ah, log aw, log ah]
    aw = anch_ref[a, 0]
    ah = anch_ref[a, 1]
    log_aw = anch_ref[a, 2]
    log_ah = anch_ref[a, 3]

    # dense (TR, 128) feature planes
    p0 = pred_ref[0]
    p1 = pred_ref[1]
    p2 = pred_ref[2]
    p3 = pred_ref[3]
    p4 = pred_ref[4]
    t0 = targ_ref[0]
    tx = targ_ref[1]
    ty = targ_ref[2]
    tw = targ_ref[3]
    th = targ_ref[4]

    tr = p0.shape[0]

    # valid-cell mask: padding is at the end of the per-anchor cell axis, so
    # only the very last block ever masks anything; cost is a few VALU ops.
    base = (sp * nj + j) * (tr * 128)
    rows = lax.broadcasted_iota(jnp.int32, (tr, 128), 0)
    cols = lax.broadcasted_iota(jnp.int32, (tr, 128), 1)
    valid = (base + rows * 128 + cols) < n_cells

    obj = (t0 == 1.0) & valid
    noobj = (t0 == 0.0) & valid

    # ---- shared exp for softplus(p0) (BCE w/ 0 target) and sigmoid(p0) -----
    e0 = jnp.exp(-jnp.abs(p0))
    bce0 = jnp.maximum(p0, 0.0) + jnp.log(1.0 + e0)
    r0 = _rcp(1.0 + e0)
    sig_p0 = jnp.where(p0 >= 0.0, r0, 1.0 - r0)

    # ---- object loss: MSE(sigmoid(p0), IoU(pred_box, target_box)) ----------
    sx = jax.nn.sigmoid(p1)
    sy = jax.nn.sigmoid(p2)
    bw = jnp.exp(p3) * aw
    bh = jnp.exp(p4) * ah

    ix = (jnp.minimum(sx + 0.5 * bw, tx + 0.5 * tw)
          - jnp.maximum(sx - 0.5 * bw, tx - 0.5 * tw))
    iy = (jnp.minimum(sy + 0.5 * bh, ty + 0.5 * th)
          - jnp.maximum(sy - 0.5 * bh, ty - 0.5 * th))
    inter = jnp.maximum(ix, 0.0) * jnp.maximum(iy, 0.0)
    union = jnp.abs(bw * bh) + jnp.abs(tw * th) - inter
    ious = inter * _rcp(union + 1e-6)

    obj_err = (sig_p0 - ious) ** 2          # t0 == 1 wherever obj selects it

    # ---- box loss: MSE over [sigmoid(x), sigmoid(y), tw_raw, th_raw] -------
    # log(1e-6 + tw/aw) == log(tw + 1e-6*aw) - log(aw)  (no per-element divide)
    twl = jnp.log(tw + 1e-6 * aw) - log_aw
    thl = jnp.log(th + 1e-6 * ah) - log_ah
    box_err = ((sx - tx) ** 2 + (sy - ty) ** 2
               + (p3 - twl) ** 2 + (p4 - thl) ** 2)

    # ---- per-step sublane-reduced accumulation into (1, 128) scratch -------
    acc_obj[...] += jnp.sum(jnp.where(obj, obj_err + 0.25 * box_err, 0.0),
                            axis=0, keepdims=True)
    acc_noobj[...] += jnp.sum(jnp.where(noobj, bce0, 0.0),
                              axis=0, keepdims=True)
    cnt_obj[...] += jnp.sum(obj.astype(jnp.float32), axis=0, keepdims=True)
    cnt_noobj[...] += jnp.sum(noobj.astype(jnp.float32), axis=0, keepdims=True)

    # ---- epilogue: write the four per-lane partial rows ---------------------
    @pl.when(j == nj - 1)
    def _():
        out_ref[0:1, :] = acc_obj[...]
        out_ref[1:2, :] = acc_noobj[...]
        out_ref[2:3, :] = cnt_obj[...]
        out_ref[3:4, :] = cnt_noobj[...]


@jax.jit
def yolo_loss_pallas(pred, target, anchors):
    B, A, S1, S2, _ = pred.shape
    M = B * S1 * S2                      # cells per anchor

    # One relayout per tensor: slice 5 features, cast, and lay out as
    # (A, 5, cells) feature planes with the cell index dense on the lane axis.
    p = jnp.transpose(pred[..., :5].astype(jnp.float32),
                      (1, 4, 0, 2, 3)).reshape(A, 5, M)
    t = jnp.transpose(target[..., :5].astype(jnp.float32),
                      (1, 4, 0, 2, 3)).reshape(A, 5, M)

    # Row / tile geometry: rows of 128 cells, sublane multiple of 8, and a
    # total row count divisible by P_SPLIT * TR.
    R = -(-M // 128)
    R = -(-R // 8) * 8
    TR = min(TR_MAX, R)
    n_j = -(-R // (TR * P_SPLIT))        # row tiles per split
    R_pad = n_j * P_SPLIT * TR
    Mpad = R_pad * 128
    pad = Mpad - M

    if pad:
        # zero padding only; pad cells are excluded in-kernel by the iota mask
        # (all math on them stays finite: tw=th=0, p*=0).
        p = jnp.pad(p, ((0, 0), (0, 0), (0, pad)))
        t = jnp.pad(t, ((0, 0), (0, 0), (0, pad)))
    p = p.reshape(A, 5, R_pad, 128)
    t = t.reshape(A, 5, R_pad, 128)

    # Tiny per-anchor scalar table: [aw, ah, log aw, log ah] -> SMEM.
    aw = anchors[:, 0].astype(jnp.float32)
    ah = anchors[:, 1].astype(jnp.float32)
    anch_info = jnp.stack([aw, ah, jnp.log(aw), jnp.log(ah)], axis=1)  # (A, 4)

    kernel = functools.partial(_yolo_loss_kernel, M)

    out = pl.pallas_call(
        kernel,
        out_shape=jax.ShapeDtypeStruct((A, P_SPLIT, 4, 128), jnp.float32),
        grid_spec=pltpu.PrefetchScalarGridSpec(
            num_scalar_prefetch=1,
            grid=(A, P_SPLIT, n_j),
            in_specs=[
                pl.BlockSpec((None, 5, TR, 128),
                             lambda a, sp, j, anch: (a, 0, sp * n_j + j, 0)),
                pl.BlockSpec((None, 5, TR, 128),
                             lambda a, sp, j, anch: (a, 0, sp * n_j + j, 0)),
            ],
            out_specs=pl.BlockSpec((None, None, 4, 128),
                                   lambda a, sp, j, anch: (a, sp, 0, 0)),
            scratch_shapes=[
                pltpu.VMEM((1, 128), jnp.float32),
                pltpu.VMEM((1, 128), jnp.float32),
                pltpu.VMEM((1, 128), jnp.float32),
                pltpu.VMEM((1, 128), jnp.float32),
            ],
        ),
        compiler_params=pltpu.CompilerParams(
            dimension_semantics=("parallel", "parallel", "arbitrary"),
            vmem_limit_bytes=40 << 20),
    )(anch_info, p, t)

    # Final tiny combine in the wrapper (lane + anchor/split reduction).
    obj_sum = jnp.sum(out[:, :, 0, :])     # sum(obj_err) + sum(box_err)/4
    noobj_sum = jnp.sum(out[:, :, 1, :])
    obj_cnt = jnp.sum(out[:, :, 2, :])
    noobj_cnt = jnp.sum(out[:, :, 3, :])
    # NOTE: plain division to stay faithful to PyTorch (NaN if a mask is empty).
    return obj_sum / obj_cnt + noobj_sum / noobj_cnt


def yolo_loss_ref(pred, target, anchors):
    """Pure-JAX reference mirroring the PyTorch forward."""
    pred = pred.astype(jnp.float32)
    target = target.astype(jnp.float32)
    A = anchors.shape[0]
    obj = target[..., 0] == 1
    noobj = target[..., 0] == 0
    p0 = pred[..., 0]
    bce = jnp.maximum(p0, 0.0) - p0 * target[..., 0] + jnp.log1p(jnp.exp(-jnp.abs(p0)))
    no_object_loss = jnp.sum(jnp.where(noobj, bce, 0.0)) / jnp.sum(noobj)

    anc = anchors.reshape(1, A, 1, 1, 2).astype(jnp.float32)
    sxy = jax.nn.sigmoid(pred[..., 1:3])
    bwh = jnp.exp(pred[..., 3:5]) * anc
    b1x1 = sxy[..., 0] - bwh[..., 0] / 2
    b1y1 = sxy[..., 1] - bwh[..., 1] / 2
    b1x2 = sxy[..., 0] + bwh[..., 0] / 2
    b1y2 = sxy[..., 1] + bwh[..., 1] / 2
    b2x1 = target[..., 1] - target[..., 3] / 2
    b2y1 = target[..., 2] - target[..., 4] / 2
    b2x2 = target[..., 1] + target[..., 3] / 2
    b2y2 = target[..., 2] + target[..., 4] / 2
    inter = (jnp.clip(jnp.minimum(b1x2, b2x2) - jnp.maximum(b1x1, b2x1), 0)
             * jnp.clip(jnp.minimum(b1y2, b2y2) - jnp.maximum(b1y1, b2y1), 0))
    union = (jnp.abs((b1x2 - b1x1) * (b1y2 - b1y1))
             + jnp.abs((b2x2 - b2x1) * (b2y2 - b2y1)) - inter)
    ious = inter / (union + 1e-6)

    obj_err = (jax.nn.sigmoid(p0) - ious * target[..., 0]) ** 2
    object_loss = jnp.sum(jnp.where(obj, obj_err, 0.0)) / jnp.sum(obj)

    tlog = jnp.log(1e-6 + target[..., 3:5] / anc)
    pred_box = jnp.concatenate([sxy, pred[..., 3:5]], axis=-1)
    targ_box = jnp.concatenate([target[..., 1:3], tlog], axis=-1)
    box_err = jnp.sum((pred_box - targ_box) ** 2, axis=-1)
    box_loss = jnp.sum(jnp.where(obj, box_err, 0.0)) / (4.0 * jnp.sum(obj))
    return box_loss + object_loss + no_object_loss


if __name__ == "__main__":
    key = jax.random.PRNGKey(0)
    k1, k2, k3, k4, k5 = jax.random.split(key, 5)

    B, A, S, C = 2, 3, 8, 8  # C = 5 + 3 classes (classes unused by this loss)

    pred = jax.random.normal(k1, (B, A, S, S, C), dtype=jnp.float32)

    obj_mask = (jax.random.uniform(k2, (B, A, S, S)) < 0.25).astype(jnp.float32)
    xy = jax.random.uniform(k3, (B, A, S, S, 2), minval=0.05, maxval=0.95)
    wh = jax.random.uniform(k4, (B, A, S, S, 2), minval=0.1, maxval=2.0)
    cls = jax.random.randint(k5, (B, A, S, S, 1), 0, 3).astype(jnp.float32)
    target = jnp.concatenate(
        [obj_mask[..., None],
         xy * obj_mask[..., None],
         wh * obj_mask[..., None],
         cls * obj_mask[..., None]], axis=-1)  # (B, A, S, S, 6)

    anchors = jnp.array([[0.28, 0.22], [0.38, 0.48], [0.90, 0.78]],
                        dtype=jnp.float32)  # (3, 2)

    loss = yolo_loss_pallas(pred, target, anchors)
    loss = jax.block_until_ready(loss)

    ref = yolo_loss_ref(pred, target, anchors)
    assert jnp.isfinite(loss), "loss is not finite"
    assert jnp.allclose(loss, ref, rtol=1e-4, atol=1e-5), (loss, ref)

    print("KERNEL_OK")
</pallas_src>

<mosaic_0001>
module attributes {stable_mosaic.version = 11 : i64} {
  func.func @_yolo_loss_kernel(%arg0: i32, %arg1: i32, %arg2: i32, %arg3: memref<3x4xf32, #tpu.memory_space<smem>>, %arg4: memref<1x5x8x128xf32, #tpu.memory_space<vmem>>, %arg5: memref<1x5x8x128xf32, #tpu.memory_space<vmem>>, %arg6: memref<1x1x4x128xf32, #tpu.memory_space<vmem>>, %arg7: memref<1x128xf32, #tpu.memory_space<vmem>>, %arg8: memref<1x128xf32, #tpu.memory_space<vmem>>, %arg9: memref<1x128xf32, #tpu.memory_space<vmem>>, %arg10: memref<1x128xf32, #tpu.memory_space<vmem>>) attributes {dimension_semantics = [#tpu.dimension_semantics<parallel>, #tpu.dimension_semantics<parallel>, #tpu.dimension_semantics<arbitrary>], iteration_bounds = array<i64: 3, 2, 1>, scalar_prefetch = 1 : i64, scratch_operands = 4 : i64, tpu.core_type = #tpu.core_type<tc>, window_params = [{transform_indices = @transform_0, window_bounds = array<i64: 1, 5, 8, 128>}, {transform_indices = @transform_1, window_bounds = array<i64: 1, 5, 8, 128>}, {transform_indices = @transform_2, window_bounds = array<i64: 1, 1, 4, 128>}]} {
    %c0_i32 = arith.constant 0 : i32
    %0 = arith.cmpi eq, %arg2, %c0_i32 : i32
    %1 = arith.extui %0 : i1 to i32
    %c0_i32_0 = arith.constant 0 : i32
    %2 = arith.cmpi ne, %1, %c0_i32_0 : i32
    scf.if %2 {
      %cst_90 = arith.constant 0.000000e+00 : f32
      %195 = vector.broadcast %cst_90 : f32 to vector<1x128xf32>
      %c0_91 = arith.constant 0 : index
      %c0_92 = arith.constant 0 : index
      %196 = vector.load %arg7[%c0_91, %c0_92] : memref<1x128xf32, #tpu.memory_space<vmem>>, vector<1x128xf32>
      tpu.vector_store %arg7[%c0_91, %c0_92], %195 {strides = array<i32>} : memref<1x128xf32, #tpu.memory_space<vmem>>, vector<1x128xf32>,
      %cst_93 = arith.constant 0.000000e+00 : f32
      %197 = vector.broadcast %cst_93 : f32 to vector<1x128xf32>
      %c0_94 = arith.constant 0 : index
      %c0_95 = arith.constant 0 : index
      %198 = vector.load %arg8[%c0_94, %c0_95] : memref<1x128xf32, #tpu.memory_space<vmem>>, vector<1x128xf32>
      tpu.vector_store %arg8[%c0_94, %c0_95], %197 {strides = array<i32>} : memref<1x128xf32, #tpu.memory_space<vmem>>, vector<1x128xf32>,
      %cst_96 = arith.constant 0.000000e+00 : f32
      %199 = vector.broadcast %cst_96 : f32 to vector<1x128xf32>
      %c0_97 = arith.constant 0 : index
      %c0_98 = arith.constant 0 : index
      %200 = vector.load %arg9[%c0_97, %c0_98] : memref<1x128xf32, #tpu.memory_space<vmem>>, vector<1x128xf32>
      tpu.vector_store %arg9[%c0_97, %c0_98], %199 {strides = array<i32>} : memref<1x128xf32, #tpu.memory_space<vmem>>, vector<1x128xf32>,
      %cst_99 = arith.constant 0.000000e+00 : f32
      %201 = vector.broadcast %cst_99 : f32 to vector<1x128xf32>
      %c0_100 = arith.constant 0 : index
      %c0_101 = arith.constant 0 : index
      %202 = vector.load %arg10[%c0_100, %c0_101] : memref<1x128xf32, #tpu.memory_space<vmem>>, vector<1x128xf32>
      tpu.vector_store %arg10[%c0_100, %c0_101], %201 {strides = array<i32>} : memref<1x128xf32, #tpu.memory_space<vmem>>, vector<1x128xf32>,
    } else {
    }
    %3 = arith.index_cast %arg0 : i32 to index
    %c0 = arith.constant 0 : index
    %4 = memref.load %arg3[%3, %c0] : memref<3x4xf32, #tpu.memory_space<smem>>
    %5 = arith.index_cast %arg0 : i32 to index
    %c1 = arith.constant 1 : index
    %6 = memref.load %arg3[%5, %c1] : memref<3x4xf32, #tpu.memory_space<smem>>
    %7 = arith.index_cast %arg0 : i32 to index
    %c2 = arith.constant 2 : index
    %8 = memref.load %arg3[%7, %c2] : memref<3x4xf32, #tpu.memory_space<smem>>
    %9 = arith.index_cast %arg0 : i32 to index
    %c3 = arith.constant 3 : index
    %10 = memref.load %arg3[%9, %c3] : memref<3x4xf32, #tpu.memory_space<smem>>
    %c0_1 = arith.constant 0 : index
    %c0_2 = arith.constant 0 : index
    %c0_3 = arith.constant 0 : index
    %c0_4 = arith.constant 0 : index
    %11 = vector.load %arg4[%c0_1, %c0_2, %c0_3, %c0_4] : memref<1x5x8x128xf32, #tpu.memory_space<vmem>>, vector<1x1x8x128xf32>
    %12 = vector.shape_cast %11 : vector<1x1x8x128xf32> to vector<8x128xf32>
    %c0_5 = arith.constant 0 : index
    %c1_6 = arith.constant 1 : index
    %c0_7 = arith.constant 0 : index
    %c0_8 = arith.constant 0 : index
    %13 = vector.load %arg4[%c0_5, %c1_6, %c0_7, %c0_8] : memref<1x5x8x128xf32, #tpu.memory_space<vmem>>, vector<1x1x8x128xf32>
    %14 = vector.shape_cast %13 : vector<1x1x8x128xf32> to vector<8x128xf32>
    %c0_9 = arith.constant 0 : index
    %c2_10 = arith.constant 2 : index
    %c0_11 = arith.constant 0 : index
    %c0_12 = arith.constant 0 : index
    %15 = vector.load %arg4[%c0_9, %c2_10, %c0_11, %c0_12] : memref<1x5x8x128xf32, #tpu.memory_space<vmem>>, vector<1x1x8x128xf32>
    %16 = vector.shape_cast %15 : vector<1x1x8x128xf32> to vector<8x128xf32>
    %c0_13 = arith.constant 0 : index
    %c3_14 = arith.constant 3 : index
    %c0_15 = arith.constant 0 : index
    %c0_16 = arith.constant 0 : index
    %17 = vector.load %arg4[%c0_13, %c3_14, %c0_15, %c0_16] : memref<1x5x8x128xf32, #tpu.memory_space<vmem>>, vector<1x1x8x128xf32>
    %18 = vector.shape_cast %17 : vector<1x1x8x128xf32> to vector<8x128xf32>
    %c0_17 = arith.constant 0 : index
    %c4 = arith.constant 4 : index
    %c0_18 = arith.constant 0 : index
    %c0_19 = arith.constant 0 : index
    %19 = vector.load %arg4[%c0_17, %c4, %c0_18, %c0_19] : memref<1x5x8x128xf32, #tpu.memory_space<vmem>>, vector<1x1x8x128xf32>
    %20 = vector.shape_cast %19 : vector<1x1x8x128xf32> to vector<8x128xf32>
    %c0_20 = arith.constant 0 : index
    %c0_21 = arith.constant 0 : index
    %c0_22 = arith.constant 0 : index
    %c0_23 = arith.constant 0 : index
    %21 = vector.load %arg5[%c0_20, %c0_21, %c0_22, %c0_23] : memref<1x5x8x128xf32, #tpu.memory_space<vmem>>, vector<1x1x8x128xf32>
    %22 = vector.shape_cast %21 : vector<1x1x8x128xf32> to vector<8x128xf32>
    %c0_24 = arith.constant 0 : index
    %c1_25 = arith.constant 1 : index
    %c0_26 = arith.constant 0 : index
    %c0_27 = arith.constant 0 : index
    %23 = vector.load %arg5[%c0_24, %c1_25, %c0_26, %c0_27] : memref<1x5x8x128xf32, #tpu.memory_space<vmem>>, vector<1x1x8x128xf32>
    %24 = vector.shape_cast %23 : vector<1x1x8x128xf32> to vector<8x128xf32>
    %c0_28 = arith.constant 0 : index
    %c2_29 = arith.constant 2 : index
    %c0_30 = arith.constant 0 : index
    %c0_31 = arith.constant 0 : index
    %25 = vector.load %arg5[%c0_28, %c2_29, %c0_30, %c0_31] : memref<1x5x8x128xf32, #tpu.memory_space<vmem>>, vector<1x1x8x128xf32>
    %26 = vector.shape_cast %25 : vector<1x1x8x128xf32> to vector<8x128xf32>
    %c0_32 = arith.constant 0 : index
    %c3_33 = arith.constant 3 : index
    %c0_34 = arith.constant 0 : index
    %c0_35 = arith.constant 0 : index
    %27 = vector.load %arg5[%c0_32, %c3_33, %c0_34, %c0_35] : memref<1x5x8x128xf32, #tpu.memory_space<vmem>>, vector<1x1x8x128xf32>
    %28 = vector.shape_cast %27 : vector<1x1x8x128xf32> to vector<8x128xf32>
    %c0_36 = arith.constant 0 : index
    %c4_37 = arith.constant 4 : index
    %c0_38 = arith.constant 0 : index
    %c0_39 = arith.constant 0 : index
    %29 = vector.load %arg5[%c0_36, %c4_37, %c0_38, %c0_39] : memref<1x5x8x128xf32, #tpu.memory_space<vmem>>, vector<1x1x8x128xf32>
    %30 = vector.shape_cast %29 : vector<1x1x8x128xf32> to vector<8x128xf32>
    %c1_i32 = arith.constant 1 : i32
    %31 = arith.muli %arg1, %c1_i32 : i32
    %32 = arith.addi %31, %arg2 : i32
    %c1024_i32 = arith.constant 1024 : i32
    %33 = arith.muli %32, %c1024_i32 : i32
    %34 = tpu.iota {dimensions = array<i32: 0>} : vector<8x128xi32>
    %35 = tpu.iota {dimensions = array<i32: 1>} : vector<8x128xi32>
    %c128_i32 = arith.constant 128 : i32
    %36 = vector.broadcast %c128_i32 : i32 to vector<8x128xi32>
    %37 = arith.muli %34, %36 : vector<8x128xi32>
    %38 = vector.broadcast %33 : i32 to vector<8x128xi32>
    %39 = arith.addi %38, %37 : vector<8x128xi32>
    %40 = arith.addi %39, %35 : vector<8x128xi32>
    %c128_i32_40 = arith.constant 128 : i32
    %41 = vector.broadcast %c128_i32_40 : i32 to vector<8x128xi32>
    %42 = arith.cmpi slt, %40, %41 : vector<8x128xi32>
    %cst = arith.constant 1.000000e+00 : f32
    %43 = vector.broadcast %cst : f32 to vector<8x128xf32>
    %44 = arith.cmpf oeq, %22, %43 : vector<8x128xf32>
    %45 = arith.andi %44, %42 : vector<8x128xi1>
    %cst_41 = arith.constant 0.000000e+00 : f32
    %46 = vector.broadcast %cst_41 : f32 to vector<8x128xf32>
    %47 = arith.cmpf oeq, %22, %46 : vector<8x128xf32>
    %48 = arith.andi %47, %42 : vector<8x128xi1>
    %49 = math.absf %12 : vector<8x128xf32>
    %cst_42 = arith.constant 0.000000e+00 : f32
    %50 = vector.broadcast %cst_42 : f32 to vector<8x128xf32>
    %51 = arith.subf %50, %49 : vector<8x128xf32>
    %52 = math.exp %51 : vector<8x128xf32>
    %cst_43 = arith.constant 0.000000e+00 : f32
    %53 = vector.broadcast %cst_43 : f32 to vector<8x128xf32>
    %54 = arith.maximumf %12, %53 : vector<8x128xf32>
    %cst_44 = arith.constant 1.000000e+00 : f32
    %55 = vector.broadcast %cst_44 : f32 to vector<8x128xf32>
    %56 = arith.addf %55, %52 : vector<8x128xf32>
    %57 = math.log %56 : vector<8x128xf32>
    %58 = arith.addf %54, %57 : vector<8x128xf32>
    %cst_45 = arith.constant 1.000000e+00 : f32
    %59 = vector.broadcast %cst_45 : f32 to vector<8x128xf32>
    %60 = arith.addf %59, %52 : vector<8x128xf32>
    %61 = tpu.reciprocal %60 {approx = true} : vector<8x128xf32> -> vector<8x128xf32>
    %62 = arith.mulf %60, %61 : vector<8x128xf32>
    %cst_46 = arith.constant 2.000000e+00 : f32
    %63 = vector.broadcast %cst_46 : f32 to vector<8x128xf32>
    %64 = arith.subf %63, %62 : vector<8x128xf32>
    %65 = arith.mulf %61, %64 : vector<8x128xf32>
    %cst_47 = arith.constant 0.000000e+00 : f32
    %66 = vector.broadcast %cst_47 : f32 to vector<8x128xf32>
    %67 = arith.cmpf oge, %12, %66 : vector<8x128xf32>
    %cst_48 = arith.constant 1.000000e+00 : f32
    %68 = vector.broadcast %cst_48 : f32 to vector<8x128xf32>
    %69 = arith.subf %68, %65 : vector<8x128xf32>
    %70 = arith.select %67, %65, %69 : vector<8x128xi1>, vector<8x128xf32>
    %71 = arith.negf %14 : vector<8x128xf32>
    %72 = math.exp %71 : vector<8x128xf32>
    %cst_49 = arith.constant 1.000000e+00 : f32
    %73 = vector.broadcast %cst_49 : f32 to vector<8x128xf32>
    %74 = arith.addf %73, %72 : vector<8x128xf32>
    %75 = arith.divf %73, %74 : vector<8x128xf32>
    %76 = arith.negf %16 : vector<8x128xf32>
    %77 = math.exp %76 : vector<8x128xf32>
    %cst_50 = arith.constant 1.000000e+00 : f32
    %78 = vector.broadcast %cst_50 : f32 to vector<8x128xf32>
    %79 = arith.addf %78, %77 : vector<8x128xf32>
    %80 = arith.divf %78, %79 : vector<8x128xf32>
    %81 = math.exp %18 : vector<8x128xf32>
    %82 = vector.broadcast %4 : f32 to vector<8x128xf32>
    %83 = arith.mulf %81, %82 : vector<8x128xf32>
    %84 = math.exp %20 : vector<8x128xf32>
    %85 = vector.broadcast %6 : f32 to vector<8x128xf32>
    %86 = arith.mulf %84, %85 : vector<8x128xf32>
    %cst_51 = arith.constant 5.000000e-01 : f32
    %87 = vector.broadcast %cst_51 : f32 to vector<8x128xf32>
    %88 = arith.mulf %87, %83 : vector<8x128xf32>
    %89 = arith.addf %75, %88 : vector<8x128xf32>
    %cst_52 = arith.constant 5.000000e-01 : f32
    %90 = vector.broadcast %cst_52 : f32 to vector<8x128xf32>
    %91 = arith.mulf %90, %28 : vector<8x128xf32>
    %92 = arith.addf %24, %91 : vector<8x128xf32>
    %93 = arith.minimumf %89, %92 : vector<8x128xf32>
    %cst_53 = arith.constant 5.000000e-01 : f32
    %94 = vector.broadcast %cst_53 : f32 to vector<8x128xf32>
    %95 = arith.mulf %94, %83 : vector<8x128xf32>
    %96 = arith.subf %75, %95 : vector<8x128xf32>
    %cst_54 = arith.constant 5.000000e-01 : f32
    %97 = vector.broadcast %cst_54 : f32 to vector<8x128xf32>
    %98 = arith.mulf %97, %28 : vector<8x128xf32>
    %99 = arith.subf %24, %98 : vector<8x128xf32>
    %100 = arith.maximumf %96, %99 : vector<8x128xf32>
    %101 = arith.subf %93, %100 : vector<8x128xf32>
    %cst_55 = arith.constant 5.000000e-01 : f32
    %102 = vector.broadcast %cst_55 : f32 to vector<8x128xf32>
    %103 = arith.mulf %102, %86 : vector<8x128xf32>
    %104 = arith.addf %80, %103 : vector<8x128xf32>
    %cst_56 = arith.constant 5.000000e-01 : f32
    %105 = vector.broadcast %cst_56 : f32 to vector<8x128xf32>
    %106 = arith.mulf %105, %30 : vector<8x128xf32>
    %107 = arith.addf %26, %106 : vector<8x128xf32>
    %108 = arith.minimumf %104, %107 : vector<8x128xf32>
    %cst_57 = arith.constant 5.000000e-01 : f32
    %109 = vector.broadcast %cst_57 : f32 to vector<8x128xf32>
    %110 = arith.mulf %109, %86 : vector<8x128xf32>
    %111 = arith.subf %80, %110 : vector<8x128xf32>
    %cst_58 = arith.constant 5.000000e-01 : f32
    %112 = vector.broadcast %cst_58 : f32 to vector<8x128xf32>
    %113 = arith.mulf %112, %30 : vector<8x128xf32>
    %114 = arith.subf %26, %113 : vector<8x128xf32>
    %115 = arith.maximumf %111, %114 : vector<8x128xf32>
    %116 = arith.subf %108, %115 : vector<8x128xf32>
    %cst_59 = arith.constant 0.000000e+00 : f32
    %117 = vector.broadcast %cst_59 : f32 to vector<8x128xf32>
    %118 = arith.maximumf %101, %117 : vector<8x128xf32>
    %cst_60 = arith.constant 0.000000e+00 : f32
    %119 = vector.broadcast %cst_60 : f32 to vector<8x128xf32>
    %120 = arith.maximumf %116, %119 : vector<8x128xf32>
    %121 = arith.mulf %118, %120 : vector<8x128xf32>
    %122 = arith.mulf %83, %86 : vector<8x128xf32>
    %123 = math.absf %122 : vector<8x128xf32>
    %124 = arith.mulf %28, %30 : vector<8x128xf32>
    %125 = math.absf %124 : vector<8x128xf32>
    %126 = arith.addf %123, %125 : vector<8x128xf32>
    %127 = arith.subf %126, %121 : vector<8x128xf32>
    %cst_61 = arith.constant 9.99999997E-7 : f32
    %128 = vector.broadcast %cst_61 : f32 to vector<8x128xf32>
    %129 = arith.addf %127, %128 : vector<8x128xf32>
    %130 = tpu.reciprocal %129 {approx = true} : vector<8x128xf32> -> vector<8x128xf32>
    %131 = arith.mulf %129, %130 : vector<8x128xf32>
    %cst_62 = arith.constant 2.000000e+00 : f32
    %132 = vector.broadcast %cst_62 : f32 to vector<8x128xf32>
    %133 = arith.subf %132, %131 : vector<8x128xf32>
    %134 = arith.mulf %130, %133 : vector<8x128xf32>
    %135 = arith.mulf %121, %134 : vector<8x128xf32>
    %136 = arith.subf %70, %135 : vector<8x128xf32>
    %137 = arith.mulf %136, %136 : vector<8x128xf32>
    %cst_63 = arith.constant 9.99999997E-7 : f32
    %138 = arith.mulf %cst_63, %4 : f32
    %139 = vector.broadcast %138 : f32 to vector<8x128xf32>
    %140 = arith.addf %28, %139 : vector<8x128xf32>
    %141 = math.log %140 : vector<8x128xf32>
    %142 = vector.broadcast %8 : f32 to vector<8x128xf32>
    %143 = arith.subf %141, %142 : vector<8x128xf32>
    %cst_64 = arith.constant 9.99999997E-7 : f32
    %144 = arith.mulf %cst_64, %6 : f32
    %145 = vector.broadcast %144 : f32 to vector<8x128xf32>
    %146 = arith.addf %30, %145 : vector<8x128xf32>
    %147 = math.log %146 : vector<8x128xf32>
    %148 = vector.broadcast %10 : f32 to vector<8x128xf32>
    %149 = arith.subf %147, %148 : vector<8x128xf32>
    %150 = arith.subf %75, %24 : vector<8x128xf32>
    %151 = arith.mulf %150, %150 : vector<8x128xf32>
    %152 = arith.subf %80, %26 : vector<8x128xf32>
    %153 = arith.mulf %152, %152 : vector<8x128xf32>
    %154 = arith.addf %151, %153 : vector<8x128xf32>
    %155 = arith.subf %18, %143 : vector<8x128xf32>
    %156 = arith.mulf %155, %155 : vector<8x128xf32>
    %157 = arith.addf %154, %156 : vector<8x128xf32>
    %158 = arith.subf %20, %149 : vector<8x128xf32>
    %159 = arith.mulf %158, %158 : vector<8x128xf32>
    %160 = arith.addf %157, %159 : vector<8x128xf32>
    %c0_65 = arith.constant 0 : index
    %c0_66 = arith.constant 0 : index
    %161 = vector.load %arg7[%c0_65, %c0_66] : memref<1x128xf32, #tpu.memory_space<vmem>>, vector<1x128xf32>
    %cst_67 = arith.constant 2.500000e-01 : f32
    %162 = vector.broadcast %cst_67 : f32 to vector<8x128xf32>
    %163 = arith.mulf %162, %160 : vector<8x128xf32>
    %164 = arith.addf %137, %163 : vector<8x128xf32>
    %cst_68 = arith.constant 0.000000e+00 : f32
    %165 = vector.broadcast %cst_68 : f32 to vector<8x128xf32>
    %166 = arith.select %45, %164, %165 : vector<8x128xi1>, vector<8x128xf32>
    %cst_69 = arith.constant dense<0.000000e+00> : vector<128xf32>
    %167 = vector.multi_reduction <add>, %166, %cst_69 [0] : vector<8x128xf32> to vector<128xf32>
    %168 = vector.shape_cast %167 : vector<128xf32> to vector<1x128xf32>
    %169 = arith.addf %161, %168 : vector<1x128xf32>
    %c0_70 = arith.constant 0 : index
    %c0_71 = arith.constant 0 : index
    %170 = vector.load %arg7[%c0_70, %c0_71] : memref<1x128xf32, #tpu.memory_space<vmem>>, vector<1x128xf32>
    tpu.vector_store %arg7[%c0_70, %c0_71], %169 {strides = array<i32>} : memref<1x128xf32, #tpu.memory_space<vmem>>, vector<1x128xf32>,
    %c0_72 = arith.constant 0 : index
    %c0_73 = arith.constant 0 : index
    %171 = vector.load %arg8[%c0_72, %c0_73] : memref<1x128xf32, #tpu.memory_space<vmem>>, vector<1x128xf32>
    %cst_74 = arith.constant 0.000000e+00 : f32
    %172 = vector.broadcast %cst_74 : f32 to vector<8x128xf32>
    %173 = arith.select %48, %58, %172 : vector<8x128xi1>, vector<8x128xf32>
    %cst_75 = arith.constant dense<0.000000e+00> : vector<128xf32>
    %174 = vector.multi_reduction <add>, %173, %cst_75 [0] : vector<8x128xf32> to vector<128xf32>
    %175 = vector.shape_cast %174 : vector<128xf32> to vector<1x128xf32>
    %176 = arith.addf %171, %175 : vector<1x128xf32>
    %c0_76 = arith.constant 0 : index
    %c0_77 = arith.constant 0 : index
    %177 = vector.load %arg8[%c0_76, %c0_77] : memref<1x128xf32, #tpu.memory_space<vmem>>, vector<1x128xf32>
    tpu.vector_store %arg8[%c0_76, %c0_77], %176 {strides = array<i32>} : memref<1x128xf32, #tpu.memory_space<vmem>>, vector<1x128xf32>,
    %c0_78 = arith.constant 0 : index
    %c0_79 = arith.constant 0 : index
    %178 = vector.load %arg9[%c0_78, %c0_79] : memref<1x128xf32, #tpu.memory_space<vmem>>, vector<1x128xf32>
    %179 = arith.extui %45 : vector<8x128xi1> to vector<8x128xi32>
    %180 = arith.sitofp %179 : vector<8x128xi32> to vector<8x128xf32>
    %cst_80 = arith.constant dense<0.000000e+00> : vector<128xf32>
    %181 = vector.multi_reduction <add>, %180, %cst_80 [0] : vector<8x128xf32> to vector<128xf32>
    %182 = vector.shape_cast %181 : vector<128xf32> to vector<1x128xf32>
    %183 = arith.addf %178, %182 : vector<1x128xf32>
    %c0_81 = arith.constant 0 : index
    %c0_82 = arith.constant 0 : index
    %184 = vector.load %arg9[%c0_81, %c0_82] : memref<1x128xf32, #tpu.memory_space<vmem>>, vector<1x128xf32>
    tpu.vector_store %arg9[%c0_81, %c0_82], %183 {strides = array<i32>} : memref<1x128xf32, #tpu.memory_space<vmem>>, vector<1x128xf32>,
    %c0_83 = arith.constant 0 : index
    %c0_84 = arith.constant 0 : index
    %185 = vector.load %arg10[%c0_83, %c0_84] : memref<1x128xf32, #tpu.memory_space<vmem>>, vector<1x128xf32>
    %186 = arith.extui %48 : vector<8x128xi1> to vector<8x128xi32>
    %187 = arith.sitofp %186 : vector<8x128xi32> to vector<8x128xf32>
    %cst_85 = arith.constant dense<0.000000e+00> : vector<128xf32>
    %188 = vector.multi_reduction <add>, %187, %cst_85 [0] : vector<8x128xf32> to vector<128xf32>
    %189 = vector.shape_cast %188 : vector<128xf32> to vector<1x128xf32>
    %190 = arith.addf %185, %189 : vector<1x128xf32>
    %c0_86 = arith.constant 0 : index
    %c0_87 = arith.constant 0 : index
    %191 = vector.load %arg10[%c0_86, %c0_87] : memref<1x128xf32, #tpu.memory_space<vmem>>, vector<1x128xf32>
    tpu.vector_store %arg10[%c0_86, %c0_87], %190 {strides = array<i32>} : memref<1x128xf32, #tpu.memory_space<vmem>>, vector<1x128xf32>,
    %c0_i32_88 = arith.constant 0 : i32
    %192 = arith.cmpi eq, %arg2, %c0_i32_88 : i32
    %193 = arith.extui %192 : i1 to i32
    %c0_i32_89 = arith.constant 0 : i32
    %194 = arith.cmpi ne, %193, %c0_i32_89 : i32
    scf.if %194 {
      %c0_90 = arith.constant 0 : index
      %c0_91 = arith.constant 0 : index
      %195 = vector.load %arg7[%c0_90, %c0_91] : memref<1x128xf32, #tpu.memory_space<vmem>>, vector<1x128xf32>
      %c0_92 = arith.constant 0 : index
      %c0_93 = arith.constant 0 : index
      %c0_94 = arith.constant 0 : index
      %c0_95 = arith.constant 0 : index
      %196 = vector.load %arg6[%c0_92, %c0_93, %c0_94, %c0_95] : memref<1x1x4x128xf32, #tpu.memory_space<vmem>>, vector<1x1x1x128xf32>
      %197 = vector.shape_cast %196 : vector<1x1x1x128xf32> to vector<1x128xf32>
      %198 = vector.shape_cast %195 : vector<1x128xf32> to vector<1x1x1x128xf32>
      tpu.vector_store %arg6[%c0_92, %c0_93, %c0_94, %c0_95], %198 {strides = array<i32>} : memref<1x1x4x128xf32, #tpu.memory_space<vmem>>, vector<1x1x1x128xf32>,
      %c0_96 = arith.constant 0 : index
      %c0_97 = arith.constant 0 : index
      %199 = vector.load %arg8[%c0_96, %c0_97] : memref<1x128xf32, #tpu.memory_space<vmem>>, vector<1x128xf32>
      %c0_98 = arith.constant 0 : index
      %c0_99 = arith.constant 0 : index
      %c1_100 = arith.constant 1 : index
      %c0_101 = arith.constant 0 : index
      %200 = vector.load %arg6[%c0_98, %c0_99, %c1_100, %c0_101] : memref<1x1x4x128xf32, #tpu.memory_space<vmem>>, vector<1x1x1x128xf32>
      %201 = vector.shape_cast %200 : vector<1x1x1x128xf32> to vector<1x128xf32>
      %202 = vector.shape_cast %199 : vector<1x128xf32> to vector<1x1x1x128xf32>
      tpu.vector_store %arg6[%c0_98, %c0_99, %c1_100, %c0_101], %202 {strides = array<i32>} : memref<1x1x4x128xf32, #tpu.memory_space<vmem>>, vector<1x1x1x128xf32>,
      %c0_102 = arith.constant 0 : index
      %c0_103 = arith.constant 0 : index
      %203 = vector.load %arg9[%c0_102, %c0_103] : memref<1x128xf32, #tpu.memory_space<vmem>>, vector<1x128xf32>
      %c0_104 = arith.constant 0 : index
      %c0_105 = arith.constant 0 : index
      %c2_106 = arith.constant 2 : index
      %c0_107 = arith.constant 0 : index
      %204 = vector.load %arg6[%c0_104, %c0_105, %c2_106, %c0_107] : memref<1x1x4x128xf32, #tpu.memory_space<vmem>>, vector<1x1x1x128xf32>
      %205 = vector.shape_cast %204 : vector<1x1x1x128xf32> to vector<1x128xf32>
      %206 = vector.shape_cast %203 : vector<1x128xf32> to vector<1x1x1x128xf32>
      tpu.vector_store %arg6[%c0_104, %c0_105, %c2_106, %c0_107], %206 {strides = array<i32>} : memref<1x1x4x128xf32, #tpu.memory_space<vmem>>, vector<1x1x1x128xf32>,
      %c0_108 = arith.constant 0 : index
      %c0_109 = arith.constant 0 : index
      %207 = vector.load %arg10[%c0_108, %c0_109] : memref<1x128xf32, #tpu.memory_space<vmem>>, vector<1x128xf32>
      %c0_110 = arith.constant 0 : index
      %c0_111 = arith.constant 0 : index
      %c3_112 = arith.constant 3 : index
      %c0_113 = arith.constant 0 : index
      %208 = vector.load %arg6[%c0_110, %c0_111, %c3_112, %c0_113] : memref<1x1x4x128xf32, #tpu.memory_space<vmem>>, vector<1x1x1x128xf32>
      %209 = vector.shape_cast %208 : vector<1x1x1x128xf32> to vector<1x128xf32>
      %210 = vector.shape_cast %207 : vector<1x128xf32> to vector<1x1x1x128xf32>
      tpu.vector_store %arg6[%c0_110, %c0_111, %c3_112, %c0_113], %210 {strides = array<i32>} : memref<1x1x4x128xf32, #tpu.memory_space<vmem>>, vector<1x1x1x128xf32>,
    } else {
    }
    return
  }
  func.func @transform_0(%arg0: i32, %arg1: i32, %arg2: i32, %arg3: memref<3x4xf32, #tpu.memory_space<smem>>) -> (i32, i32, i32, i32) {
    %c1_i32 = arith.constant 1 : i32
    %0 = arith.muli %arg1, %c1_i32 : i32
    %1 = arith.addi %0, %arg2 : i32
    %c0_i32 = arith.constant 0 : i32
    %c0_i32_0 = arith.constant 0 : i32
    %c0_i32_1 = arith.constant 0 : i32
    return %arg0, %c0_i32, %1, %c0_i32_0 : i32, i32, i32, i32
  }
  func.func @transform_1(%arg0: i32, %arg1: i32, %arg2: i32, %arg3: memref<3x4xf32, #tpu.memory_space<smem>>) -> (i32, i32, i32, i32) {
    %c1_i32 = arith.constant 1 : i32
    %0 = arith.muli %arg1, %c1_i32 : i32
    %1 = arith.addi %0, %arg2 : i32
    %c0_i32 = arith.constant 0 : i32
    %c0_i32_0 = arith.constant 0 : i32
    %c0_i32_1 = arith.constant 0 : i32
    return %arg0, %c0_i32, %1, %c0_i32_0 : i32, i32, i32, i32
  }
  func.func @transform_2(%arg0: i32, %arg1: i32, %arg2: i32, %arg3: memref<3x4xf32, #tpu.memory_space<smem>>) -> (i32, i32, i32, i32) {
    %c0_i32 = arith.constant 0 : i32
    %c0_i32_0 = arith.constant 0 : i32
    %c0_i32_1 = arith.constant 0 : i32
    return %arg0, %arg1, %c0_i32, %c0_i32_0 : i32, i32, i32, i32
  }
}

</mosaic_0001>

<bundles_post_ra>
// kernel: yolo_loss_pallas.1
= control target key start
LH: loop header
LB: loop body
LE: loop exit
PB: predicated region body
PF: predicated region fallthrough
CT: control target
= control target key end

     0   :  { %s1006_s0 = inlined_call_operand.vmem [shape: f32[3,4], index: 0, kind: input, shape index: {}]   ;;  %s1007_s1 = inlined_call_operand.vmem [shape: f32[3,5,16,128], index: 1, kind: input, shape index: {}]   ;;  %s1008_s2 = inlined_call_operand.vmem [shape: f32[3,5,16,128], index: 2, kind: input, shape index: {}]   ;;  %s1009_s3 = inlined_call_operand.vmem [shape: f32[3,2,4,128], index: 3, kind: output, shape index: {}]  }
   0x1   :  { %s8_s14 = sshll.u32 %s1006_s0, 4  ;;  %s9_s14 = int_to_ptr.vmem [resolvable:$true] %s8_s14 }
   0x2   :  { %s741_s15 = scalar_lea.vmem %s9_s14, 64  ;;  %p746_p1 = scmp.lt.s32.totalorder %s9_s14, %s9_s14 }
   0x3   :  { %p742_p0 = scmp.ne.s32.totalorder %s9_s14, %s741_s15  ;;  %p747_p2 = scmp.lt.s32.totalorder %s741_s15, %s741_s15 }
   0x5   :  { %p748_p3 = por %p747_p2, %p746_p1 }
   0x7   :  { %p749_p4 = pnand %p748_p3, %p742_p0 }
   0x9   :  { %752 = shalt.err (!%p749_p4)  }
   0xa   :  { %s811_s16 = smov [#allocation7]  }
   0xb   :  { %11 = dma.vmem_to_smem %s9_s14, 64, %s811_s16, [#allocation6] }
   0xc   :  { %781 = dma.done.wait [#allocation6], 64 }
   0xd   :  { %782 = vsyncadd [#allocation6], 4294967232 }
   0xe   :  { %13 = sfence }
   0xf   :  { %s836_s17 = smov 0   ;;  %s838_s18 = smov 0  }
  0x10   :  { %s840_s19 = smov 0   ;;  %s842_s0 = smov 0  }
  0x11   :  { %s844_s20 = smov 0   ;;  %s846_s21 = smov 0  }
  0x12   :  { %s848_s22 = smov 0  }
  0x13 LB: > { %s34_s23 = sadd.s32 1, %s801_s20  ;;  %s38_s24 = sadd.s32 1, %s805_s21  ;;  %s809_s22 = sphi %s848_s22, %s19_s22   ;;  %s805_s21 = sphi %s846_s21, %s1020_s21   ;;  %s801_s20 = sphi %s844_s20, %s1019_s20   ;;  %s797_s0 = sphi %s842_s0, %s1018_s0   ;;  %s793_s19 = sphi %s840_s19, %s1017_s19   ;;  %s789_s18 = sphi %s838_s18, %s1016_s18   ;;  %s785_s17 = sphi %s836_s17, %s1015_s17  }
  0x14   : > { %p36_p5 = scmp.ge.s32.totalorder %s34_s23, 2  ;;  %p56_p6 = scmp.ne.s32.totalorder %s789_s18, %s785_s17 }
  0x15   : > { %p57_p7 = scmp.eq.s32.totalorder %s809_s22, 0  ;;  %s49_s29 = sadd.s32 1, %s789_s18 }
  0x16   : > { %s1022_s23 = smov (%p36_p5, %s34_s23), 0  ;;  %s1024_s24 = smov (!%p36_p5, %s38_s24), %s805_s21 }
  0x17   : > { %p879_p8 = por %p57_p7, %p56_p6  ;;  %p40_p9 = scmp.ge.s32.totalorder %s1024_s24, 3 }
  0x18   : > { %s45_s26 = ssub.s32 %s801_s20, %s1022_s23  ;;  %p632_p11 = scmp.ge.s32.totalorder %s809_s22, 6 }
  0x19   : > { %s1026_s24 = smov (%p40_p9, %s1024_s24), 0 }
  0x1a   : > { %s44_s27 = ssub.s32 %s805_s21, %s1026_s24  ;;  %140 = sbr.rel (%p632_p11) target bundleno = 51 (0x33), region = 16 }
  0x1b   : > { %s46_s28 = sor.u32 %s45_s26, %s44_s27 }
  0x1c   : > { %p47_p10 = scmp.eq.s32.totalorder %s46_s28, 0 }
  0x1e   : > { %s891_s30 = scalar_select %p47_p10, %s789_s18, %s49_s29  }
  0x1f   : > { %143 = sbr.rel (!%p879_p8) target bundleno = 41 (0x29), region = 20  ;;  %s145_s4 = sand.u32 (%p879_p8), 1, %s789_s18  }
  0x20   : > { %s655_s5 = smul.u32 (%p879_p8), 10, %s805_s21 }
  0x21   : > { %s654_s6 = smul.u32 (%p879_p8), 40, %s145_s4 }
  0x22   : > { %s150_s7 = sadd.s32 (%p879_p8), %s801_s20, %s655_s5 }
  0x23   : > { %s633_s8 = sshll.u32 (%p879_p8), %s150_s7, 3  ;;  %s147_s12 = scalar_lea.vmem (%p879_p8), [#allocation8], %s654_s6 }
  0x24   : > { %s152_s11 = scalar_lea.vmem %s1007_s1, %s633_s8 }
  0x25   : > { %v189_v0 = vld [vmem:[%s152_s11] sm:$0xff]  ;;  %v191_v1 = vld [vmem:[%s152_s11 + $0x10] sm:$0xff] }
  0x26   : > { %v193_v2 = vld [vmem:[%s152_s11 + $0x20] sm:$0xff]  ;;  %190 = vst [vmem:[%s147_s12] sm:$0xff] %v189_v0  ;;  %192 = vst [vmem:[%s147_s12 + $0x8] sm:$0xff] %v191_v1  ;;  %v195_v3 = vld [vmem:[%s152_s11 + $0x30] sm:$0xff] }
  0x27   : > { %194 = vst [vmem:[%s147_s12 + $0x10] sm:$0xff] %v193_v2  ;;  %v197_v4 = vld [vmem:[%s152_s11 + $0x40] sm:$0xff]  ;;  %196 = vst [vmem:[%s147_s12 + $0x18] sm:$0xff] %v195_v3 }
  0x28   : > { %198 = vst [vmem:[%s147_s12 + $0x20] sm:$0xff] %v197_v4 }
  0x29 PF: > { %204 = sbr.rel (!%p879_p8) target bundleno = 51 (0x33), region = 58  ;;  %s206_s13 = sand.u32 (%p879_p8), 1, %s789_s18  }
  0x2a   : > { %s657_s14 = smul.u32 (%p879_p8), 10, %s805_s21 }
  0x2b   : > { %s656_s15 = smul.u32 (%p879_p8), 40, %s206_s13 }
  0x2c   : > { %s211_s16 = sadd.s32 (%p879_p8), %s801_s20, %s657_s14 }
  0x2d   : > { %s634_s26 = sshll.u32 (%p879_p8), %s211_s16, 3  ;;  %s208_s4 = scalar_lea.vmem (%p879_p8), [#allocation9], %s656_s15 }
  0x2e   : > { %s213_s29 = scalar_lea.vmem %s1008_s2, %s634_s26 }
  0x2f   : > { %v250_v5 = vld [vmem:[%s213_s29] sm:$0xff]  ;;  %v252_v6 = vld [vmem:[%s213_s29 + $0x10] sm:$0xff] }
  0x30   : > { %v254_v7 = vld [vmem:[%s213_s29 + $0x20] sm:$0xff]  ;;  %251 = vst [vmem:[%s208_s4] sm:$0xff] %v250_v5  ;;  %253 = vst [vmem:[%s208_s4 + $0x8] sm:$0xff] %v252_v6  ;;  %v256_v8 = vld [vmem:[%s213_s29 + $0x30] sm:$0xff] }
  0x31   : > { %255 = vst [vmem:[%s208_s4 + $0x10] sm:$0xff] %v254_v7  ;;  %v258_v9 = vld [vmem:[%s213_s29 + $0x40] sm:$0xff]  ;;  %257 = vst [vmem:[%s208_s4 + $0x18] sm:$0xff] %v256_v8 }
  0x32   : > { %259 = vst [vmem:[%s208_s4 + $0x20] sm:$0xff] %v258_v9 }
  0x33 PF: > { %p635_p12 = scmp.ge.s32.totalorder %s809_s22, 1  ;;  %p264_p13 = scmp.lt.s32.totalorder %s809_s22, 7 }
  0x35   : > { %p265_p0 = pnand %p635_p12, %p264_p13 }
  0x36   : > { %s271_s25 = sand.u32 (!%p265_p0), 1, %s785_s17   ;;  %s647_s7 = sshll.u32 (!%p265_p0), %s793_s19, 10 }
  0x37   : > { %268 = sbr.rel (%p265_p0) target bundleno = 162 (0xa2), region = 96  ;;  %s935_s17 = sshll.u32 (!%p265_p0), %s797_s0, 7 }
  0x38   : > { %s658_s5 = smul.u32 (!%p265_p0), 40, %s271_s25  ;;  %s942_s9 = sld [smem:[#allocation7 + %s935_s17]] (!%p265_p0) }
  0x39   : > { %s326_s10 = sadd.s32 (!%p265_p0), 1, %s935_s17  ;;  %p308_p1 = scmp.lt.s32.totalorder (!%p265_p0), %s797_s0, 2 }
  0x3a   : > { %s273_s6 = scalar_lea.vmem (!%p265_p0), [#allocation8], %s658_s5  ;;  %s916_s8 = scalar_lea.vmem (!%p265_p0), [#allocation9], %s658_s5 }
  0x3b   : > { %s946_s11 = sld [smem:[#allocation7 + %s326_s10]] (!%p265_p0)  ;;  %p310_p2 = scmp.lt.s32.totalorder (!%p265_p0), %s793_s19, 1 }
  0x3c   : > { %v352_v10 = vlaneseq  ;;  %v812_v11 = vmov 0.0   ;;  %v913_v13 = vld [vmem:[%s273_s6] sm:$0xff]  ;;  %v639_v14 = vld [vmem:[%s273_s6 + $0x8] sm:$0xff]  ;;  %v640_v16 = vld [vmem:[%s273_s6 + $0x10] sm:$0xff]  ;;  %v357_v19 = vstv %s647_s7  ;;  %s1028_s0 = smov (!%p308_p1, %s797_s0), 2  ;;  %s328_s27 = sadd.s32 2, %s935_s17 }
  0x3d   : > { %320 = vst [vmem:[#allocation2] sm:$0x1] %v812_v11  ;;  %321 = vst [vmem:[#allocation3] sm:$0x1] %v812_v11  ;;  %v341_v18 = vld [vmem:[%s916_s8] sm:$0xff]  ;;  %v920_v23 = vld [vmem:[%s273_s6 + $0x18] sm:$0xff] }
  0x3e   : > { %322 = vst [vmem:[#allocation4] sm:$0x1] %v812_v11  ;;  %323 = vst [vmem:[#allocation5] sm:$0x1] %v812_v11  ;;  %v353_v12 = vshrl.u32 %v352_v10, 7  ;;  %v355_v17 = vand.u32 127, %v352_v10  ;;  %v395_v56 = vstv %s942_s9 }
  0x3f   : > { %v365_v21 = vand.u32 2147483647, %v913_v13  ;;  %v648_v22 = vmul.f32 -1.442695, %v639_v14  ;;  %v649_v24 = vmul.f32 -1.442695, %v640_v16 }
  0x40   : > { %v356_v15 = vmul.u32 128, %v353_v12  ;;  %v922_v25 = vld [vmem:[%s273_s6 + $0x20] sm:$0xff]  ;;  %vm361_vm0 = vcmp.eq.f32.partialorder %v341_v18, 1.0  ;;  %vm363_vm1 = vcmp.eq.f32.partialorder %v341_v18, 0.0  ;;  %v393_v29 = vmul.f32 1.442695, %v920_v23 }
  0x41   : > { %v366_v27 = vsub.f32 0.0, %v365_v21  ;;  %717 = vpow2.f32 %v648_v22  ;;  %v397_v31 = vmul.f32 1.442695, %v922_v25  ;;  %s436_s12 = smul.f32 1e-06, %s942_s9  ;;  %s1030_s19 = smov (!%p310_p2, %s793_s19), 1  ;;  %v399_v60 = vstv %s946_s11 }
  0x42   : > { %v358_v20 = vadd.s32 %v357_v19, %v356_v15  ;;  %719 = vpow2.f32 %v649_v24  ;;  %s636_s13 = sshll.u32 %s1028_s0, 1  ;;  %s443_s14 = smul.f32 1e-06, %s946_s11  ;;  %v645_v62 = vld [vmem:[%s916_s8 + $0x18] sm:$0xff]  ;;  %v646_v63 = vld [vmem:[%s916_s8 + $0x20] sm:$0xff]  ;;  %v643_v5 = vld [vmem:[%s916_s8 + $0x8] sm:$0xff] }
  0x43   : > { %v367_v28 = vmul.f32 1.442695, %v366_v27  ;;  %v437_v61 = vstv %s436_s12  ;;  %s313_s15 = sadd.s32 %s636_s13, %s1030_s19  ;;  %v403_v3 = vmul.f32 0.5, %v645_v62  ;;  %v412_v6 = vmul.f32 0.5, %v646_v63  ;;  %v644_v7 = vld [vmem:[%s916_s8 + $0x10] sm:$0xff]  ;;  %s329_s28 = sld [smem:[#allocation7 + %s328_s27]] }
  0x44   : > { %v359_v26 = vadd.s32 %v358_v20, %v355_v17  ;;  %v438_v2 = vadd.f32 %v645_v62, %v437_v61  ;;  %s637_s0 = sshll.u32 %s313_s15, 2  ;;  %v444_v4 = vstv %s443_s14  ;;  %v424_v14 = vmul.f32 %v646_v63, %v645_v62  ;;  %s330_s29 = sadd.s32 3, %s935_s17 }
  0x45   : > { %721 = vpow2.f32 %v367_v28  ;;  %v483_v49 = vld [vmem:[#allocation4] sm:$0x1]  ;;  %v494_v50 = vld [vmem:[#allocation5] sm:$0x1]  ;;  %s967_s19 = scalar_lea.vmem %s1009_s3, %s637_s0  ;;  %v445_v10 = vadd.f32 %v646_v63, %v444_v4  ;;  %v407_v12 = vsub.f32 %v643_v5, %v403_v3  ;;  %v413_v18 = vadd.f32 %v644_v7, %v412_v6  ;;  %s331_s4 = sld [smem:[#allocation7 + %s330_s29]] }
  0x46   : > { %vm360_vm2 = vcmp.lt.s32.totalorder %v359_v26, 128  ;;  %723 = vpow2.f32 %v393_v29  ;;  %v416_v19 = vsub.f32 %v644_v7, %v412_v6  ;;  %vm378_vm5 = vcmp.ge.f32.partialorder %v913_v13, 0.0 }
  0x47   : > { %vm925_vm3 = vmand %vm361_vm0, %vm360_vm2  ;;  %725 = vpow2.f32 %v397_v31  ;;  %v425_v31 = vand.u32 2147483647, %v424_v14 }
  0x48   : > { %vm930_vm4 = vmand %vm363_vm1, %vm360_vm2  ;;  %v650_v33 = vsel %vm925_vm3, 1.0, %v812_v11 }
  0x49   : > { %v651_v34 = vsel %vm930_vm4, 1.0, %v812_v11  ;;  %v486_v35 = vrot.slane %v650_v33, 4  ;;  %v404_v11 = vadd.f32 %v643_v5, %v403_v3 }
  0x4a   : > { %v497_v36 = vrot.slane %v651_v34, 4 }
  0x4b   : > { %v487_v37 = vadd.f32 %v650_v33, %v486_v35  ;;  %v448_v63 = vstv %s331_s4 }
  0x4c   : > { %v498_v38 = vadd.f32 %v651_v34, %v497_v36  ;;  %v369_v36 = vmax.f32 %v913_v13, 0.0 }
  0x4d   : > { %v488_v39 = vrot.slane %v487_v37, 2 }
  0x4e   : > { %v499_v40 = vrot.slane %v498_v38, 2  ;;  %v718_v41 = vpop.eup %717 }
  0x4f   : > { %v489_v42 = vadd.f32 %v488_v39, %v487_v37  ;;  %v720_v44 = vpop.eup %719  ;;  %v384_v45 = vadd.f32 1.0, %v718_v41 }
  0x50   : > { %v500_v43 = vadd.f32 %v499_v40, %v498_v38  ;;  %v390_v46 = vadd.f32 1.0, %v720_v44 }
  0x51   : > { %v490_v47 = vrot.slane %v489_v42, 1  ;;  %727 = vrcp.f32 %v384_v45 }
  0x52   : > { %v501_v48 = vrot.slane %v500_v43, 1  ;;  %v722_v51 = vpop.eup %721  ;;  %729 = vrcp.f32 %v390_v46 }
  0x53   : > { %v491_v52 = vadd.f32 %v490_v47, %v489_v42  ;;  %v724_v54 = vpop.eup %723  ;;  %v954_v55 = vadd.f32 1.0, %v722_v51 }
  0x54   : > { %v502_v53 = vadd.f32 %v501_v48, %v500_v43  ;;  %v726_v59 = vpop.eup %725  ;;  %v396_v0 = vmul.f32 %v724_v54, %v395_v56  ;;  %v441_v54 = vstv %s329_s28 }
  0x55   : > { %v492_v57 = vadd.f32 %v491_v52, %v483_v49  ;;  %731 = vlog2.f32 %v954_v55  ;;  %v400_v1 = vmul.f32 %v726_v59, %v399_v60 }
  0x56   : > { %v503_v58 = vadd.f32 %v502_v53, %v494_v50  ;;  %v401_v8 = vmul.f32 0.5, %v396_v0  ;;  %733 = vlog2.f32 %v438_v2 }
  0x57   : > { %493 = vst [vmem:[#allocation4] sm:$0x1] %v492_v57  ;;  %v410_v9 = vmul.f32 0.5, %v400_v1  ;;  %v422_v20 = vmul.f32 %v400_v1, %v396_v0  ;;  %735 = vlog2.f32 %v445_v10  ;;  %v473_v1 = vld [vmem:[#allocation3] sm:$0x1] }
  0x58   : > { %504 = vst [vmem:[#allocation5] sm:$0x1] %v503_v58  ;;  %737 = vrcp.f32 %v954_v55 }
  0x59   : > { %v423_v35 = vand.u32 2147483647, %v422_v20 }
  0x5b   : > { %v426_v43 = vadd.f32 %v425_v31, %v423_v35  ;;  %v461_v35 = vld [vmem:[#allocation2] sm:$0x1] }
  0x5e   : > { %v512_v15 = vld [vmem:[#allocation4] sm:$0x1]  ;;  %v728_v17 = vpop.eup %727 }
  0x5f   : > { %v514_v16 = vld [vmem:[#allocation5] sm:$0x1]  ;;  %513 = vst [vmem:[%s967_s19 + $0x2] sm:$0x1] %v512_v15  ;;  %v730_v21 = vpop.eup %729  ;;  %v402_v22 = vadd.f32 %v728_v17, %v401_v8  ;;  %v406_v24 = vsub.f32 %v728_v17, %v401_v8  ;;  %v450_v61 = vsub.f32 %v728_v17, %v643_v5 }
  0x60   : > { %515 = vst [vmem:[%s967_s19 + $0x3] sm:$0x1] %v514_v16  ;;  %v411_v26 = vadd.f32 %v730_v21, %v410_v9  ;;  %v415_v27 = vsub.f32 %v730_v21, %v410_v9  ;;  %v452_v62 = vsub.f32 %v730_v21, %v644_v7 }
  0x61   : > { %v405_v28 = vmin.f32 %v402_v22, %v404_v11  ;;  %v408_v29 = vmax.f32 %v406_v24, %v407_v12  ;;  %v451_v4 = vmul.f32 %v450_v61, %v450_v61 }
  0x62   : > { %v414_v33 = vmin.f32 %v411_v26, %v413_v18  ;;  %v417_v34 = vmax.f32 %v415_v27, %v416_v19  ;;  %v732_v37 = vpop.eup %731  ;;  %v453_v6 = vmul.f32 %v452_v62, %v452_v62 }
  0x63   : > { %v409_v38 = vsub.f32 %v405_v28, %v408_v29  ;;  %v372_v40 = vmul.f32 0.6931472, %v732_v37  ;;  %v734_v47 = vpop.eup %733 }
  0x64   : > { %v418_v39 = vsub.f32 %v414_v33, %v417_v34  ;;  %v440_v52 = vmul.f32 0.6931472, %v734_v47  ;;  %v736_v53 = vpop.eup %735  ;;  %v454_v11 = vadd.f32 %v453_v6, %v451_v4 }
  0x65   : > { %v419_v41 = vmax.f32 %v409_v38, 0.0  ;;  %v373_v44 = vadd.f32 %v372_v40, %v369_v36  ;;  %v738_v57 = vpop.eup %737  ;;  %v447_v60 = vmul.f32 0.6931472, %v736_v53 }
  0x66   : > { %v420_v42 = vmax.f32 %v418_v39, 0.0  ;;  %v442_v59 = vsub.f32 %v440_v52, %v441_v54  ;;  %v375_v32 = vmul.f32 %v738_v57, %v954_v55 }
  0x67   : > { %v474_v46 = vsel %vm930_vm4, %v373_v44, 0.0  ;;  %v449_v3 = vsub.f32 %v447_v60, %v448_v63 }
  0x68   : > { %v421_v45 = vmul.f32 %v420_v42, %v419_v41  ;;  %v475_v48 = vrot.slane %v474_v46, 4  ;;  %v455_v8 = vsub.f32 %v920_v23, %v442_v59  ;;  %v376_v9 = vsub.f32 2.0, %v375_v32 }
  0x69   : > { %v458_v5 = vsub.f32 %v922_v25, %v449_v3 }
  0x6a   : > { %v427_v49 = vsub.f32 %v426_v43, %v421_v45  ;;  %v476_v50 = vadd.f32 %v475_v48, %v474_v46  ;;  %v456_v12 = vmul.f32 %v455_v8, %v455_v8  ;;  %v377_v7 = vmul.f32 %v738_v57, %v376_v9 }
  0x6b   : > { %v459_v16 = vmul.f32 %v458_v5, %v458_v5 }
  0x6c   : > { %v428_v51 = vadd.f32 1e-06, %v427_v49  ;;  %v477_v56 = vrot.slane %v476_v50, 2  ;;  %v457_v15 = vadd.f32 %v456_v12, %v454_v11  ;;  %v379_v17 = vsub.f32 1.0, %v377_v7 }
  0x6e   : > { %739 = vrcp.f32 %v428_v51  ;;  %v478_v58 = vadd.f32 %v477_v56, %v476_v50  ;;  %v460_v20 = vadd.f32 %v459_v16, %v457_v15  ;;  %v380_v21 = vsel %vm378_vm5, %v377_v7, %v379_v17 }
  0x70   : > { %v479_v0 = vrot.slane %v478_v58, 1  ;;  %v462_v26 = vmul.f32 0.25, %v460_v20 }
  0x72   : > { %v480_v2 = vadd.f32 %v479_v0, %v478_v58 }
  0x74   : > { %v481_v10 = vadd.f32 %v480_v2, %v473_v1 }
  0x76   : > { %482 = vst [vmem:[#allocation3] sm:$0x1] %v481_v10 }
  0x7b   : > { %v740_v14 = vpop.eup %739 }
  0x7c   : > { %v430_v55 = vmul.f32 %v740_v14, %v428_v51 }
  0x7d   : > { %v510_v19 = vld [vmem:[#allocation3] sm:$0x1] }
  0x7e   : > { %v431_v18 = vsub.f32 2.0, %v430_v55  ;;  %511 = vst [vmem:[%s967_s19 + $0x1] sm:$0x1] %v510_v19 }
  0x80   : > { %v432_v23 = vmul.f32 %v740_v14, %v431_v18 }
  0x82   : > { %v433_v22 = vmul.f32 %v432_v23, %v421_v45 }
  0x84   : > { %v434_v24 = vsub.f32 %v380_v21, %v433_v22 }
  0x86   : > { %v435_v27 = vmul.f32 %v434_v24, %v434_v24 }
  0x88   : > { %v463_v25 = vadd.f32 %v462_v26, %v435_v27 }
  0x8a   : > { %v464_v28 = vsel %vm925_vm3, %v463_v25, 0.0 }
  0x8b   : > { %v465_v29 = vrot.slane %v464_v28, 4 }
  0x8d   : > { %v466_v31 = vadd.f32 %v465_v29, %v464_v28 }
  0x8f   : > { %v467_v33 = vrot.slane %v466_v31, 2 }
  0x91   : > { %v468_v34 = vadd.f32 %v467_v33, %v466_v31 }
  0x93   : > { %v469_v13 = vrot.slane %v468_v34, 1 }
  0x95   : > { %v470_v36 = vadd.f32 %v469_v13, %v468_v34 }
  0x97   : > { %v471_v37 = vadd.f32 %v470_v36, %v461_v35 }
  0x99   : > { %472 = vst [vmem:[#allocation2] sm:$0x1] %v471_v37 }
  0xa0   : > { %v508_v38 = vld [vmem:[#allocation2] sm:$0x1] }
  0xa1   : > { %509 = vst [vmem:[%s967_s19] sm:$0x1] %v508_v38 }
  0xa2 PF: > { %s19_s22 = sadd.s32 1, %s809_s22   ;;  %s1015_s17 = smov %s789_s18 }
  0xa3   : > { %p16_p3 = scmp.ge.s32.totalorder %s19_s22, 8   ;;  %s1016_s18 = smov %s891_s30 }
  0xa4   : > { %s1017_s19 = smov %s801_s20  ;;  %s1018_s0 = smov %s805_s21 }
  0xa5   : > { %s1019_s20 = smov %s1022_s23  ;;  %s1020_s21 = smov %s1026_s24 }
  0xa6   :  { %18 = sbr.rel (!%p16_p3) target bundleno = 19 (0x13), region = 163 }

</bundles_post_ra>
